<compile_context>
chip_gen: v5e
topology: v5e:2x2
jax: 0.10.0
libtpu: 0.0.40
codegen_flags: <defaults>
</compile_context>

<pallas_src>
import functools

import jax
import jax.numpy as jnp
from jax import lax
from jax.experimental import pallas as pl
from jax.experimental.pallas import tpu as pltpu


def _cdiv(a, b):
    return (a + b - 1) // b


def _round_up(x, m):
    return ((x + m - 1) // m) * m


def autopad(k, p=None):
    if p is None:
        p = k // 2 if isinstance(k, int) else [v // 2 for v in k]
    return p


# ------------------------------ tile selection --------------------------------

def _select_tiles(M, K, Cout, block_m, block_n, block_k):
    """Choose (bm, bn, bk, Kp) for the fused matmul."""
    # K (contraction): single unpadded block when it fits (tiny-K layers pay
    # essentially no zero-padding); otherwise a 128-multiple tile, preferably
    # one dividing K exactly so no K padding is materialized in HBM.
    if K <= block_k:
        bk = _round_up(K, 8)            # mild sublane alignment, ~free
        Kp = bk
    else:
        bk = 0
        for cand in range(block_k - block_k % 128, 127, -128):
            if K % cand == 0:
                bk = cand
                break
        if bk == 0:
            bk = max(128, block_k - block_k % 128)
        Kp = _round_up(K, bk)
    # N (Cout): a single full tile when it fits -> each activation byte is
    # read from HBM exactly once. (Lane width < 128 only happens for
    # small-Cout layers, where masked stores are irrelevant.)
    bn = Cout if Cout <= block_n else block_n
    # M: as large as possible, multiple of 8; ragged tails are handled by
    # Pallas boundary blocks (never-stored garbage rows).
    bm = min(block_m, _round_up(M, 8))
    # v7x megacore: keep >= 2 "parallel" tiles so both TensorCores get work.
    while _cdiv(M, bm) * _cdiv(Cout, bn) < 2 and bm > 8 and bm % 16 == 0:
        bm //= 2
    return bm, bn, bk, Kp


# ------------------------------- Pallas kernel --------------------------------

def _matmul_bias_act_kernel(x_ref, w_ref, b_ref, o_ref, acc_ref, *,
                            apply_act, negative_slope):
    """(bm,bk) x (bk,bn) tile matmul, K-accumulated in f32, + bias + LeakyReLU."""
    @pl.when(pl.program_id(2) == 0)
    def _init():
        acc_ref[...] = jnp.zeros_like(acc_ref)

    acc_ref[...] += jnp.dot(x_ref[...], w_ref[...],
                            preferred_element_type=jnp.float32)

    @pl.when(pl.program_id(2) == pl.num_programs(2) - 1)
    def _epilogue():
        y = acc_ref[...] + b_ref[...]
        if apply_act:
            # LeakyReLU with slope in [0,1]  ==  max(y, slope*y): one VPU max.
            y = jnp.maximum(y, y * negative_slope)
        o_ref[...] = y.astype(o_ref.dtype)


# ----------------------------- pallas_call wrapper -----------------------------

def fused_matmul_bias_act(x2d, w2d, bias, *, bm, bn, bk, apply_act=True,
                          negative_slope=0.1, out_dtype=jnp.bfloat16):
    """y = act(x2d @ w2d + bias).

    x2d: (M, Kp) bf16 im2col'd activations;  w2d: (Kp, Cout) bf16 with the BN
    scale pre-folded;  bias: (Cout,) f32.  Requires Kp % bk == 0 (K padding is
    the only padding that affects numerics).
    """
    M, Kp = x2d.shape
    Kp2, Cout = w2d.shape
    assert Kp == Kp2 and Kp % bk == 0, (Kp, Kp2, bk)
    grid = (_cdiv(M, bm), _cdiv(Cout, bn), Kp // bk)
    bias2d = bias.astype(jnp.float32).reshape(1, Cout)

    return pl.pallas_call(
        functools.partial(_matmul_bias_act_kernel, apply_act=apply_act,
                          negative_slope=negative_slope),
        out_shape=jax.ShapeDtypeStruct((M, Cout), out_dtype),
        grid_spec=pltpu.PrefetchScalarGridSpec(
            num_scalar_prefetch=0,
            grid=grid,
            in_specs=[
                pl.BlockSpec((bm, bk), lambda i, j, k: (i, k)),
                pl.BlockSpec((bk, bn), lambda i, j, k: (k, j)),
                pl.BlockSpec((1, bn), lambda i, j, k: (0, j)),
            ],
            out_specs=pl.BlockSpec((bm, bn), lambda i, j, k: (i, j)),
            scratch_shapes=[pltpu.VMEM((bm, bn), jnp.float32)],
        ),
        compiler_params=pltpu.CompilerParams(
            dimension_semantics=("parallel", "parallel", "arbitrary"),
            # ~6-8 MiB actually used at 512x512x1024 tiles; a 48 MiB cap stays
            # under v7x's 64 MiB/TC and v5e/v6e physical VMEM.
            vmem_limit_bytes=48 * 1024 * 1024,
        ),
    )(x2d, w2d, bias2d)


# -------------------------------- conv wrapper ---------------------------------

def _im2col(x_nhwc, k, stride, pad, k_tail):
    """(N,H,W,C) -> (N*Ho*Wo, k*k*C + k_tail) patches (tap-major, chan-minor).

    Input should already be in the compute dtype (bf16) so this single pass is
    the only patch materialization; the zero K-tail is folded into the same
    concatenate (no separate pad pass).
    """
    N, H, W, C = x_nhwc.shape
    Ho = (H + 2 * pad - k) // stride + 1
    Wo = (W + 2 * pad - k) // stride + 1
    if k == 1 and stride == 1 and pad == 0:
        x2d = x_nhwc.reshape(N * H * W, C)
        if k_tail:
            x2d = jnp.pad(x2d, ((0, 0), (0, k_tail)))
        return x2d, Ho, Wo
    xp = jnp.pad(x_nhwc, ((0, 0), (pad, pad), (pad, pad), (0, 0)))
    cols = []
    for ky in range(k):
        for kx in range(k):
            cols.append(lax.slice(
                xp,
                (0, ky, kx, 0),
                (N, ky + (Ho - 1) * stride + 1,
                 kx + (Wo - 1) * stride + 1, C),
                (1, stride, stride, 1)))
    if k_tail:
        cols.append(jnp.zeros((N, Ho, Wo, k_tail), x_nhwc.dtype))
    patches = jnp.concatenate(cols, axis=-1)        # (N, Ho, Wo, k*k*C + tail)
    return patches.reshape(N * Ho * Wo, k * k * C + k_tail), Ho, Wo


def conv_bn_act_nhwc(x_nhwc, w_oihw, scale, bias, *, k=1, s=1, p=None, g=1,
                     apply_act=True, negative_slope=0.1,
                     block_m=512, block_n=512, block_k=1024,
                     compute_dtype=jnp.bfloat16, out_dtype=jnp.bfloat16):
    """Fused Conv2d(bias=False) + BatchNorm2d(inference) + LeakyReLU, NHWC."""
    assert g == 1, "TODO(synk): grouped convolutions not implemented"
    pad = autopad(k, p)
    N, H, W, Cin = x_nhwc.shape
    Cout = w_oihw.shape[0]
    assert w_oihw.shape == (Cout, Cin, k, k), w_oihw.shape

    Ho = (H + 2 * pad - k) // s + 1
    Wo = (W + 2 * pad - k) // s + 1
    M = N * Ho * Wo
    K = k * k * Cin
    bm, bn, bk, Kp = _select_tiles(M, K, Cout, block_m, block_n, block_k)

    # OIHW -> (ky, kx, Cin, Cout) -> (k*k*Cin, Cout); matches im2col order.
    # Fold the BN scale into the weights in f32, then quantize once to bf16.
    w2d = jnp.transpose(w_oihw, (2, 3, 1, 0)).reshape(K, Cout)
    w2d = (w2d.astype(jnp.float32) * scale[None, :].astype(jnp.float32))
    w2d = w2d.astype(compute_dtype)
    if Kp > K:
        w2d = jnp.pad(w2d, ((0, Kp - K), (0, 0)))

    # Cast activations to bf16 *before* im2col; K zero-tail folded in.
    x2d, Ho, Wo = _im2col(x_nhwc.astype(compute_dtype), k, s, pad, Kp - K)

    y2d = fused_matmul_bias_act(x2d, w2d, bias, bm=bm, bn=bn, bk=bk,
                                apply_act=apply_act,
                                negative_slope=negative_slope,
                                out_dtype=out_dtype)
    return y2d.reshape(N, Ho, Wo, Cout)


def conv_bn_act(x_nchw, w_oihw, scale, bias, **kwargs):
    """PyTorch-layout entry point: x NCHW, weights OIHW. Returns NCHW."""
    # TODO(synk): keep the surrounding model NHWC and call conv_bn_act_nhwc
    # directly; these transposes are two extra HBM passes per layer.
    x_nhwc = jnp.transpose(x_nchw, (0, 2, 3, 1))
    y_nhwc = conv_bn_act_nhwc(x_nhwc, w_oihw, scale, bias, **kwargs)
    return jnp.transpose(y_nhwc, (0, 3, 1, 2))


# ------------------------------ plain-JAX reference ----------------------------

def ref_conv_bn_act(x_nchw, w_oihw, scale, bias, *, k=1, s=1, p=None,
                    apply_act=True, negative_slope=0.1):
    """Reference matching the kernel's quantization points: BN scale folded
    into weights, inputs/weights bf16-quantized, f32 accumulation."""
    pad = autopad(k, p)
    xq = x_nchw.astype(jnp.bfloat16).astype(jnp.float32)
    wf = w_oihw * scale[:, None, None, None]
    wq = wf.astype(jnp.bfloat16).astype(jnp.float32)
    dn = ('NCHW', 'OIHW', 'NCHW')
    y = lax.conv_general_dilated(xq, wq, (s, s), ((pad, pad), (pad, pad)),
                                 dimension_numbers=dn)
    y = y + bias[None, :, None, None]
    if apply_act:
        y = jnp.maximum(y, y * negative_slope)
    return y


# ------------------------------------ main -------------------------------------

if __name__ == "__main__":
    key = jax.random.PRNGKey(0)
    ks = jax.random.split(key, 8)

    N, C1, H, W = 2, 4, 16, 16
    x = jax.random.normal(ks[0], (N, C1, H, W), jnp.float32)

    def bn_params(kk, c):
        k1, k2, k3, k4 = jax.random.split(kk, 4)
        gamma = jax.random.uniform(k1, (c,), jnp.float32, 0.5, 1.5)
        beta = jax.random.normal(k2, (c,), jnp.float32) * 0.1
        mean = jax.random.normal(k3, (c,), jnp.float32) * 0.1
        var = jax.random.uniform(k4, (c,), jnp.float32, 0.5, 1.5)
        eps = 1e-5
        scale = gamma / jnp.sqrt(var + eps)
        bias = beta - mean * scale
        return scale, bias

    # Config 1: Conv defaults (k=1, s=1, LeakyReLU(0.1)) -- tiny-K direct path.
    # Config 2: k=3, s=2 (autopad=1) -- im2col / strided path.
    configs = [dict(c2=32, k=1, s=1), dict(c2=48, k=3, s=2)]

    for idx, cfg in enumerate(configs):
        c2, kk, ss = cfg["c2"], cfg["k"], cfg["s"]
        w = jax.random.normal(ks[1 + 2 * idx],
                              (c2, C1, kk, kk), jnp.float32) * 0.1
        scale, bias = bn_params(ks[2 + 2 * idx], c2)

        out = conv_bn_act(x, w, scale, bias, k=kk, s=ss)
        out = jax.block_until_ready(out)

        ref = ref_conv_bn_act(x, w, scale, bias, k=kk, s=ss)

        pad = autopad(kk)
        Ho = (H + 2 * pad - kk) // ss + 1
        Wo = (W + 2 * pad - kk) // ss + 1
        assert out.shape == (N, c2, Ho, Wo), out.shape
        out_f32 = out.astype(jnp.float32)
        max_err = float(jnp.max(jnp.abs(out_f32 - ref)))
        # Output is bf16 (review: halve writeback), so allow ~1 bf16 ulp.
        assert jnp.allclose(out_f32, ref, atol=2e-2, rtol=2e-2), max_err

    print("KERNEL_OK")
</pallas_src>

<mosaic_0001>
module attributes {stable_mosaic.version = 11 : i64} {
  func.func @_matmul_bias_act_kernel(%arg0: i32, %arg1: i32, %arg2: i32, %arg3: memref<256x8xbf16, #tpu.memory_space<vmem>>, %arg4: memref<8x32xbf16, #tpu.memory_space<vmem>>, %arg5: memref<1x32xf32, #tpu.memory_space<vmem>>, %arg6: memref<256x32xbf16, #tpu.memory_space<vmem>>, %arg7: memref<256x32xf32, #tpu.memory_space<vmem>>) attributes {dimension_semantics = [#tpu.dimension_semantics<parallel>, #tpu.dimension_semantics<parallel>, #tpu.dimension_semantics<arbitrary>], iteration_bounds = array<i64: 2, 1, 1>, scalar_prefetch = 0 : i64, scratch_operands = 1 : i64, tpu.core_type = #tpu.core_type<tc>, window_params = [{transform_indices = @transform_0, window_bounds = array<i64: 256, 8>}, {transform_indices = @transform_1, window_bounds = array<i64: 8, 32>}, {transform_indices = @transform_2, window_bounds = array<i64: 1, 32>}, {transform_indices = @transform_3, window_bounds = array<i64: 256, 32>}]} {
    %c0_i32 = arith.constant 0 : i32
    %0 = arith.cmpi eq, %arg2, %c0_i32 : i32
    %1 = arith.extui %0 : i1 to i32
    %c0_i32_0 = arith.constant 0 : i32
    %2 = arith.cmpi ne, %1, %c0_i32_0 : i32
    scf.if %2 {
      %cst_10 = arith.constant 0.000000e+00 : f32
      %12 = vector.broadcast %cst_10 : f32 to vector<256x32xf32>
      %c0_11 = arith.constant 0 : index
      %c0_12 = arith.constant 0 : index
      %13 = vector.load %arg7[%c0_11, %c0_12] : memref<256x32xf32, #tpu.memory_space<vmem>>, vector<256x32xf32>
      tpu.vector_store %arg7[%c0_11, %c0_12], %12 {strides = array<i32>} : memref<256x32xf32, #tpu.memory_space<vmem>>, vector<256x32xf32>,
    } else {
    }
    %c0 = arith.constant 0 : index
    %c0_1 = arith.constant 0 : index
    %3 = vector.load %arg7[%c0, %c0_1] : memref<256x32xf32, #tpu.memory_space<vmem>>, vector<256x32xf32>
    %c0_2 = arith.constant 0 : index
    %c0_3 = arith.constant 0 : index
    %4 = vector.load %arg3[%c0_2, %c0_3] : memref<256x8xbf16, #tpu.memory_space<vmem>>, vector<256x8xbf16>
    %c0_4 = arith.constant 0 : index
    %c0_5 = arith.constant 0 : index
    %5 = vector.load %arg4[%c0_4, %c0_5] : memref<8x32xbf16, #tpu.memory_space<vmem>>, vector<8x32xbf16>
    %cst = arith.constant dense<0.000000e+00> : vector<256x32xf32>
    %6 = tpu.matmul %4, %5, %cst {dimension_numbers = #tpu.dot_dimension_numbers<[1], [0], [0], [1], [0, 0, 1, 1], [], []>} : vector<256x8xbf16>, vector<8x32xbf16>, vector<256x32xf32> -> vector<256x32xf32>
    %7 = arith.addf %3, %6 : vector<256x32xf32>
    %c0_6 = arith.constant 0 : index
    %c0_7 = arith.constant 0 : index
    %8 = vector.load %arg7[%c0_6, %c0_7] : memref<256x32xf32, #tpu.memory_space<vmem>>, vector<256x32xf32>
    tpu.vector_store %arg7[%c0_6, %c0_7], %7 {strides = array<i32>} : memref<256x32xf32, #tpu.memory_space<vmem>>, vector<256x32xf32>,
    %c0_i32_8 = arith.constant 0 : i32
    %9 = arith.cmpi eq, %arg2, %c0_i32_8 : i32
    %10 = arith.extui %9 : i1 to i32
    %c0_i32_9 = arith.constant 0 : i32
    %11 = arith.cmpi ne, %10, %c0_i32_9 : i32
    scf.if %11 {
      %c0_10 = arith.constant 0 : index
      %c0_11 = arith.constant 0 : index
      %12 = vector.load %arg7[%c0_10, %c0_11] : memref<256x32xf32, #tpu.memory_space<vmem>>, vector<256x32xf32>
      %c0_12 = arith.constant 0 : index
      %c0_13 = arith.constant 0 : index
      %13 = vector.load %arg5[%c0_12, %c0_13] : memref<1x32xf32, #tpu.memory_space<vmem>>, vector<1x32xf32>
      %14 = vector.broadcast %13 : vector<1x32xf32> to vector<256x32xf32>
      %15 = arith.addf %12, %14 : vector<256x32xf32>
      %cst_14 = arith.constant 1.000000e-01 : f32
      %16 = vector.broadcast %cst_14 : f32 to vector<256x32xf32>
      %17 = arith.mulf %15, %16 : vector<256x32xf32>
      %18 = arith.maximumf %15, %17 : vector<256x32xf32>
      %19 = arith.truncf %18 : vector<256x32xf32> to vector<256x32xbf16>
      %c0_15 = arith.constant 0 : index
      %c0_16 = arith.constant 0 : index
      %20 = vector.load %arg6[%c0_15, %c0_16] : memref<256x32xbf16, #tpu.memory_space<vmem>>, vector<256x32xbf16>
      tpu.vector_store %arg6[%c0_15, %c0_16], %19 {strides = array<i32>} : memref<256x32xbf16, #tpu.memory_space<vmem>>, vector<256x32xbf16>,
    } else {
    }
    return
  }
  func.func @transform_0(%arg0: i32, %arg1: i32, %arg2: i32) -> (i32, i32) {
    %c0_i32 = arith.constant 0 : i32
    return %arg0, %arg2 : i32, i32
  }
  func.func @transform_1(%arg0: i32, %arg1: i32, %arg2: i32) -> (i32, i32) {
    %c0_i32 = arith.constant 0 : i32
    return %arg2, %arg1 : i32, i32
  }
  func.func @transform_2(%arg0: i32, %arg1: i32, %arg2: i32) -> (i32, i32) {
    %c0_i32 = arith.constant 0 : i32
    %c0_i32_0 = arith.constant 0 : i32
    return %c0_i32, %arg1 : i32, i32
  }
  func.func @transform_3(%arg0: i32, %arg1: i32, %arg2: i32) -> (i32, i32) {
    %c0_i32 = arith.constant 0 : i32
    return %arg0, %arg1 : i32, i32
  }
}

</mosaic_0001>

<bundles_post_ra>
// kernel: tpu_custom_call.1
= control target key start
LH: loop header
LB: loop body
LE: loop exit
PB: predicated region body
PF: predicated region fallthrough
CT: control target
= control target key end

     0   :  { %s1138_s12 = smov 0   ;;  %s1140_s13 = smov 0   ;;  %s1382_s0 = inlined_call_operand.vmem [shape: bf16[512,8], index: 0, kind: input, shape index: {}]   ;;  %s1383_s1 = inlined_call_operand.vmem [shape: bf16[8,32], index: 1, kind: input, shape index: {}]   ;;  %s1384_s2 = inlined_call_operand.vmem [shape: f32[1,32], index: 2, kind: input, shape index: {}]   ;;  %s1385_s3 = inlined_call_operand.vmem [shape: bf16[512,32], index: 3, kind: output, shape index: {}]  }
   0x1   :  { %s1142_s14 = smov 0  }
   0x2 LB: > { %s32_s15 = sadd.s32 1, %s1111_s13  ;;  %p961_p0 = scmp.ge.s32.totalorder %s1115_s14, 1  ;;  %s1115_s14 = sphi %s1142_s14, %s13_s14   ;;  %s1111_s13 = sphi %s1140_s13, %s1387_s13   ;;  %s1107_s12 = sphi %s1138_s12, %s1386_s12  }
   0x3   : > { %p34_p1 = scmp.ge.s32.totalorder %s32_s15, 2  ;;  %p186_p2 = scmp.lt.s32.totalorder %s1115_s14, 3 }
   0x5   : > { %s1389_s15 = smov (%p34_p1, %s32_s15), 0  ;;  %p187_p3 = pnand %p961_p0, %p186_p2 }
   0x6   : > { %s962_s18 = sshll.u32 (!%p187_p3), %s1107_s12, 5 }
   0x7   : > { %190 = sbr.rel (%p187_p3) target bundleno = 227 (0xe3), region = 32  ;;  %p227_p4 = scmp.lt.s32.totalorder (!%p187_p3), %s962_s18, 63 }
   0xc   : > { %v356_v0 = vld [vmem:[%s1383_s1] sm:$0xf]  ;;  %vm486_vm0 = vcmask 1043456   ;;  %s1391_s18 = smov (!%p227_p4, %s962_s18), 63  ;;  %vm437_vm1 = vcmask 64512   ;;  %vm259_vm2 = vcmask 261120  }
   0xd   : > { %v488_v1 = vsel %vm486_vm0, %v356_v0, 0  ;;  %s963_s19 = sshll.u32 %s1391_s18, 2  ;;  %v1117_v10 = vmov 0.0   ;;  %v1238_v29 = vld [vmem:[%s1384_s2] ss:$0 sm:$0xff]  ;;  %vm811_vm3 = vcmask 257024  }
   0xe   : > { %497 = vmatpush.bf16.msra.mxu0 %v488_v1  ;;  %1064 = vmatpush.bf16.msra.mxu1 %v488_v1  ;;  %s1167_s22 = scalar_lea.vmem %s1382_s0, %s963_s19  ;;  %260 = vst.msk [vmem:[#allocation2] sm:$0xff] %vm259_vm2, %v1117_v10  ;;  %s1251_s27 = scalar_lea.vmem %s1385_s3, %s963_s19 }
   0xf   : > { %1065 = vmatpush.bf16.msra.mxu2 %v488_v1  ;;  %1066 = vmatpush.bf16.msra.mxu3 %v488_v1  ;;  %v1048_v2 = vld [vmem:[%s1167_s22] sm:$0xff]  ;;  %v1049_v6 = vld [vmem:[%s1167_s22 + $0x8] sm:$0xff]  ;;  %261 = vst.msk [vmem:[#allocation2 + $0x8] sm:$0xff] %vm259_vm2, %v1117_v10  ;;  %v1050_v11 = vld [vmem:[%s1167_s22 + $0x10] sm:$0xff] }
  0x10   : > { %v1052_v3 = vld [vmem:[%s1167_s22 + $0x20] sm:$0xff]  ;;  %v1053_v7 = vld [vmem:[%s1167_s22 + $0x28] sm:$0xff]  ;;  %262 = vst.msk [vmem:[#allocation2 + $0x10] sm:$0xff] %vm259_vm2, %v1117_v10  ;;  %v1054_v12 = vld [vmem:[%s1167_s22 + $0x30] sm:$0xff] }
  0x11   : > { %v1056_v4 = vld [vmem:[%s1167_s22 + $0x40] sm:$0xff]  ;;  %1030 = vmatmul.msk.bf16.vlgmr.msra.gmra.mxu0 %vm437_vm1, %v1048_v2  ;;  %1034 = vmatmul.msk.bf16.vlgmr.msra.gmra.mxu1 %vm437_vm1, %v1052_v3  ;;  %v1057_v8 = vld [vmem:[%s1167_s22 + $0x48] sm:$0xff]  ;;  %263 = vst.msk [vmem:[#allocation2 + $0x18] sm:$0xff] %vm259_vm2, %v1117_v10  ;;  %v1058_v13 = vld [vmem:[%s1167_s22 + $0x50] sm:$0xff] }
  0x12   : > { %v1060_v5 = vld [vmem:[%s1167_s22 + $0x60] sm:$0xff]  ;;  %1038 = vmatmul.msk.bf16.vlgmr.msra.gmra.mxu2 %vm437_vm1, %v1056_v4  ;;  %v1061_v9 = vld [vmem:[%s1167_s22 + $0x68] sm:$0xff]  ;;  %264 = vst.msk [vmem:[#allocation2 + $0x20] sm:$0xff] %vm259_vm2, %v1117_v10  ;;  %v1062_v14 = vld [vmem:[%s1167_s22 + $0x70] sm:$0xff] }
  0x13   : > { %1042 = vmatmul.msk.bf16.vlgmr.msra.gmra.mxu3 %vm437_vm1, %v1060_v5  ;;  %265 = vst.msk [vmem:[#allocation2 + $0x28] sm:$0xff] %vm259_vm2, %v1117_v10  ;;  %v1051_v15 = vld [vmem:[%s1167_s22 + $0x18] sm:$0xff] }
  0x14   : > { %266 = vst.msk [vmem:[#allocation2 + $0x30] sm:$0xff] %vm259_vm2, %v1117_v10  ;;  %v1055_v16 = vld [vmem:[%s1167_s22 + $0x38] sm:$0xff] }
  0x15   : > { %267 = vst.msk [vmem:[#allocation2 + $0x38] sm:$0xff] %vm259_vm2, %v1117_v10  ;;  %v1059_v17 = vld [vmem:[%s1167_s22 + $0x58] sm:$0xff]  ;;  %v292_v19 = vld [vmem:[#allocation2] sm:$0xff] }
  0x16   : > { %268 = vst.msk [vmem:[#allocation2 + $0x40] sm:$0xff] %vm259_vm2, %v1117_v10  ;;  %v1063_v18 = vld [vmem:[%s1167_s22 + $0x78] sm:$0xff]  ;;  %v293_v27 = vld [vmem:[#allocation2 + $0x8] sm:$0xff] }
  0x17   : > { %269 = vst.msk [vmem:[#allocation2 + $0x48] sm:$0xff] %vm259_vm2, %v1117_v10  ;;  %v294_v49 = vld [vmem:[#allocation2 + $0x10] sm:$0xff] }
  0x18   : > { %270 = vst.msk [vmem:[#allocation2 + $0x50] sm:$0xff] %vm259_vm2, %v1117_v10 }
  0x19   : > { %271 = vst.msk [vmem:[#allocation2 + $0x58] sm:$0xff] %vm259_vm2, %v1117_v10 }
  0x1a   : > { %272 = vst.msk [vmem:[#allocation2 + $0x60] sm:$0xff] %vm259_vm2, %v1117_v10 }
  0x1b   : > { %273 = vst.msk [vmem:[#allocation2 + $0x68] sm:$0xff] %vm259_vm2, %v1117_v10 }
  0x1c   : > { %274 = vst.msk [vmem:[#allocation2 + $0x70] sm:$0xff] %vm259_vm2, %v1117_v10 }
  0x1d   : > { %275 = vst.msk [vmem:[#allocation2 + $0x78] sm:$0xff] %vm259_vm2, %v1117_v10  ;;  %v300_v20 = vld [vmem:[#allocation2 + $0x40] sm:$0xff] }
  0x1e   : > { %276 = vst.msk [vmem:[#allocation2 + $0x80] sm:$0xff] %vm259_vm2, %v1117_v10  ;;  %v301_v28 = vld [vmem:[#allocation2 + $0x48] sm:$0xff] }
  0x1f   : > { %277 = vst.msk [vmem:[#allocation2 + $0x88] sm:$0xff] %vm259_vm2, %v1117_v10  ;;  %v302_v53 = vld [vmem:[#allocation2 + $0x50] sm:$0xff] }
  0x20   : > { %278 = vst.msk [vmem:[#allocation2 + $0x90] sm:$0xff] %vm259_vm2, %v1117_v10 }
  0x21   : > { %1031 = vmatmul.msk.bf16.gmra.mxu0 %vm437_vm1, %v1049_v6  ;;  %1035 = vmatmul.msk.bf16.gmra.mxu1 %vm437_vm1, %v1053_v7  ;;  %279 = vst.msk [vmem:[#allocation2 + $0x98] sm:$0xff] %vm259_vm2, %v1117_v10 }
  0x22   : > { %1039 = vmatmul.msk.bf16.gmra.mxu2 %vm437_vm1, %v1057_v8  ;;  %280 = vst.msk [vmem:[#allocation2 + $0xa0] sm:$0xff] %vm259_vm2, %v1117_v10 }
  0x23   : > { %1043 = vmatmul.msk.bf16.gmra.mxu3 %vm437_vm1, %v1061_v9  ;;  %281 = vst.msk [vmem:[#allocation2 + $0xa8] sm:$0xff] %vm259_vm2, %v1117_v10 }
  0x24   : > { %282 = vst.msk [vmem:[#allocation2 + $0xb0] sm:$0xff] %vm259_vm2, %v1117_v10 }
  0x25   : > { %283 = vst.msk [vmem:[#allocation2 + $0xb8] sm:$0xff] %vm259_vm2, %v1117_v10  ;;  %v308_v25 = vld [vmem:[#allocation2 + $0x80] sm:$0xff] }
  0x26   : > { %284 = vst.msk [vmem:[#allocation2 + $0xc0] sm:$0xff] %vm259_vm2, %v1117_v10  ;;  %v309_v43 = vld [vmem:[#allocation2 + $0x88] sm:$0xff] }
  0x27   : > { %285 = vst.msk [vmem:[#allocation2 + $0xc8] sm:$0xff] %vm259_vm2, %v1117_v10 }
  0x28   : > { %286 = vst.msk [vmem:[#allocation2 + $0xd0] sm:$0xff] %vm259_vm2, %v1117_v10 }
  0x29   : > { %287 = vst.msk [vmem:[#allocation2 + $0xd8] sm:$0xff] %vm259_vm2, %v1117_v10 }
  0x2a   : > { %288 = vst.msk [vmem:[#allocation2 + $0xe0] sm:$0xff] %vm259_vm2, %v1117_v10 }
  0x2b   : > { %289 = vst.msk [vmem:[#allocation2 + $0xe8] sm:$0xff] %vm259_vm2, %v1117_v10 }
  0x2c   : > { %290 = vst.msk [vmem:[#allocation2 + $0xf0] sm:$0xff] %vm259_vm2, %v1117_v10 }
  0x2d   : > { %291 = vst.msk [vmem:[#allocation2 + $0xf8] sm:$0xff] %vm259_vm2, %v1117_v10  ;;  %v316_v26 = vld [vmem:[#allocation2 + $0xc0] sm:$0xff]  ;;  %v310_v10 = vld [vmem:[#allocation2 + $0x90] sm:$0xff] }
  0x2e   : > { %v317_v45 = vld [vmem:[#allocation2 + $0xc8] sm:$0xff] }
  0x31   : > { %1032 = vmatmul.msk.bf16.gmra.mxu0 %vm437_vm1, %v1050_v11  ;;  %1036 = vmatmul.msk.bf16.gmra.mxu1 %vm437_vm1, %v1054_v12 }
  0x32   : > { %1040 = vmatmul.msk.bf16.gmra.mxu2 %vm437_vm1, %v1058_v13 }
  0x33   : > { %1044 = vmatmul.msk.bf16.gmra.mxu3 %vm437_vm1, %v1062_v14 }
  0x41   : > { %1033 = vmatmul.msk.bf16.gmra.mxu0 %vm437_vm1, %v1051_v15  ;;  %1037 = vmatmul.msk.bf16.gmra.mxu1 %vm437_vm1, %v1055_v16  ;;  %v318_v15 = vld [vmem:[#allocation2 + $0xd0] sm:$0xff] }
  0x42   : > { %1041 = vmatmul.msk.bf16.gmra.mxu2 %vm437_vm1, %v1059_v17 }
  0x43   : > { %1045 = vmatmul.msk.bf16.gmra.mxu3 %vm437_vm1, %v1063_v18 }
  0x8e   : > { %v499_v21 = vpop.f32.mrf.mxu0  ;;  %v519_v22 = vpop.f32.mrf.mxu1 }
  0x8f   : > { %v579_v23 = vadd.f32 %v499_v21, %v292_v19  ;;  %v587_v24 = vadd.f32 %v519_v22, %v300_v20  ;;  %v295_v21 = vld [vmem:[#allocation2 + $0x18] sm:$0xff] }
  0x91   : > { %612 = vst.msk [vmem:[#allocation2] sm:$0xff] %vm259_vm2, %v579_v23 }
  0x92   : > { %620 = vst.msk [vmem:[#allocation2 + $0x40] sm:$0xff] %vm259_vm2, %v587_v24 }
  0x95   : > { %v539_v30 = vpop.f32.mrf.mxu2 }
  0x96   : > { %v559_v31 = vpop.f32.mrf.mxu3  ;;  %v595_v32 = vadd.f32 %v539_v30, %v308_v25  ;;  %v501_v34 = vpop.f32.mrf.mxu0  ;;  %v303_v25 = vld [vmem:[#allocation2 + $0x58] sm:$0xff] }
  0x97   : > { %v603_v33 = vadd.f32 %v559_v31, %v316_v26  ;;  %v521_v35 = vpop.f32.mrf.mxu1  ;;  %v580_v36 = vadd.f32 %v501_v34, %v293_v27 }
  0x98   : > { %v588_v37 = vadd.f32 %v521_v35, %v301_v28  ;;  %v647_v38 = vld [vmem:[#allocation2] sm:$0xff]  ;;  %628 = vst.msk [vmem:[#allocation2 + $0x80] sm:$0xff] %vm259_vm2, %v595_v32  ;;  %v311_v35 = vld [vmem:[#allocation2 + $0x98] sm:$0xff] }
  0x99   : > { %v683_v39 = vadd.f32 %v1238_v29, %v647_v38  ;;  %v655_v40 = vld [vmem:[#allocation2 + $0x40] sm:$0xff]  ;;  %636 = vst.msk [vmem:[#allocation2 + $0xc0] sm:$0xff] %vm259_vm2, %v603_v33 }
  0x9a   : > { %v691_v41 = vadd.f32 %v1238_v29, %v655_v40  ;;  %613 = vst.msk [vmem:[#allocation2 + $0x8] sm:$0xff] %vm259_vm2, %v580_v36  ;;  %v319_v36 = vld [vmem:[#allocation2 + $0xd8] sm:$0xff] }
  0x9b   : > { %v715_v42 = vmul.f32 0.1, %v683_v39  ;;  %621 = vst.msk [vmem:[#allocation2 + $0x48] sm:$0xff] %vm259_vm2, %v588_v37 }
  0x9c   : > { %v723_v44 = vmul.f32 0.1, %v691_v41 }
  0x9d   : > { %v747_v46 = vmax.f32 %v683_v39, %v715_v42  ;;  %v541_v47 = vpop.f32.mrf.mxu2 }
  0x9e   : > { %v561_v48 = vpop.f32.mrf.mxu3  ;;  %v755_v50 = vmax.f32 %v691_v41, %v723_v44  ;;  %v596_v51 = vadd.f32 %v541_v47, %v309_v43  ;;  %v504_v52 = vpop.f32.mrf.mxu0 }
  0x9f   : > { %v524_v54 = vpop.f32.mrf.mxu1  ;;  %v779_v55 = vpack.c.bf16 %v747_v46, %v747_v46  ;;  %v663_v56 = vld [vmem:[#allocation2 + $0x80] sm:$0xff]  ;;  %v604_v57 = vadd.f32 %v561_v48, %v317_v45  ;;  %v581_v61 = vadd.f32 %v504_v52, %v294_v49 }
  0xa0   : > { %v787_v58 = vpack.c.bf16 %v755_v50, %v755_v50  ;;  %v699_v59 = vadd.f32 %v1238_v29, %v663_v56  ;;  %v671_v60 = vld [vmem:[#allocation2 + $0xc0] sm:$0xff]  ;;  %629 = vst.msk [vmem:[#allocation2 + $0x88] sm:$0xff] %vm259_vm2, %v596_v51  ;;  %v589_v0 = vadd.f32 %v524_v54, %v302_v53 }
  0xa1   : > { %812 = vst.msk [vmem:[%s1251_s27] sm:$0xf] %vm811_vm3, %v779_v55  ;;  %v707_v62 = vadd.f32 %v1238_v29, %v671_v60  ;;  %v648_v63 = vld [vmem:[#allocation2 + $0x8] sm:$0xff]  ;;  %v296_v52 = vld [vmem:[#allocation2 + $0x20] sm:$0xff] }
  0xa2   : > { %820 = vst.msk [vmem:[%s1251_s27 + $0x20] sm:$0xf] %vm811_vm3, %v787_v58  ;;  %v731_v1 = vmul.f32 0.1, %v699_v59  ;;  %v684_v2 = vadd.f32 %v1238_v29, %v648_v63  ;;  %v656_v3 = vld [vmem:[#allocation2 + $0x48] sm:$0xff]  ;;  %v304_v54 = vld [vmem:[#allocation2 + $0x60] sm:$0xff] }
  0xa3   : > { %v739_v4 = vmul.f32 0.1, %v707_v62  ;;  %v692_v5 = vadd.f32 %v1238_v29, %v656_v3  ;;  %637 = vst.msk [vmem:[#allocation2 + $0xc8] sm:$0xff] %vm259_vm2, %v604_v57  ;;  %v320_v63 = vld [vmem:[#allocation2 + $0xe0] sm:$0xff]  ;;  %v305_v3 = vld [vmem:[#allocation2 + $0x68] sm:$0xff] }
  0xa4   : > { %v763_v6 = vmax.f32 %v699_v59, %v731_v1  ;;  %v716_v7 = vmul.f32 0.1, %v684_v2  ;;  %614 = vst.msk [vmem:[#allocation2 + $0x10] sm:$0xff] %vm259_vm2, %v581_v61 }
  0xa5   : > { %v771_v8 = vmax.f32 %v707_v62, %v739_v4  ;;  %v724_v9 = vmul.f32 0.1, %v692_v5  ;;  %622 = vst.msk [vmem:[#allocation2 + $0x50] sm:$0xff] %vm259_vm2, %v589_v0  ;;  %v544_v11 = vpop.f32.mrf.mxu2  ;;  %v312_v62 = vld [vmem:[#allocation2 + $0xa0] sm:$0xff] }
  0xa6   : > { %v564_v12 = vpop.f32.mrf.mxu3  ;;  %v795_v13 = vpack.c.bf16 %v763_v6, %v763_v6  ;;  %v748_v14 = vmax.f32 %v684_v2, %v716_v7  ;;  %v506_v16 = vpop.f32.mrf.mxu0  ;;  %v597_v24 = vadd.f32 %v544_v11, %v310_v10  ;;  %v297_v2 = vld [vmem:[#allocation2 + $0x28] sm:$0xff] }
  0xa7   : > { %v526_v17 = vpop.f32.mrf.mxu1  ;;  %v803_v18 = vpack.c.bf16 %v771_v8, %v771_v8  ;;  %v756_v19 = vmax.f32 %v692_v5, %v724_v9  ;;  %v664_v20 = vld [vmem:[#allocation2 + $0x88] sm:$0xff]  ;;  %v605_v27 = vadd.f32 %v564_v12, %v318_v15  ;;  %v582_v31 = vadd.f32 %v506_v16, %v295_v21 }
  0xa8   : > { %828 = vst.msk [vmem:[%s1251_s27 + $0x40] sm:$0xf] %vm811_vm3, %v795_v13  ;;  %v780_v22 = vpack.c.bf16 %v748_v14, %v748_v14  ;;  %v700_v23 = vadd.f32 %v1238_v29, %v664_v20  ;;  %v590_v34 = vadd.f32 %v526_v17, %v303_v25 }
  0xa9   : > { %836 = vst.msk [vmem:[%s1251_s27 + $0x60] sm:$0xf] %vm811_vm3, %v803_v18  ;;  %v788_v26 = vpack.c.bf16 %v756_v19, %v756_v19 }
  0xaa   : > { %813 = vst.msk [vmem:[%s1251_s27 + $0x4] sm:$0xf] %vm811_vm3, %v780_v22  ;;  %v732_v28 = vmul.f32 0.1, %v700_v23  ;;  %v672_v30 = vld [vmem:[#allocation2 + $0xc8] sm:$0xff] }
  0xab   : > { %821 = vst.msk [vmem:[%s1251_s27 + $0x24] sm:$0xf] %vm811_vm3, %v788_v26  ;;  %v708_v32 = vadd.f32 %v1238_v29, %v672_v30  ;;  %v649_v33 = vld [vmem:[#allocation2 + $0x10] sm:$0xff] }
  0xac   : > { %v764_v37 = vmax.f32 %v700_v23, %v732_v28  ;;  %v685_v38 = vadd.f32 %v1238_v29, %v649_v33  ;;  %v657_v39 = vld [vmem:[#allocation2 + $0x50] sm:$0xff]  ;;  %630 = vst.msk [vmem:[#allocation2 + $0x90] sm:$0xff] %vm259_vm2, %v597_v24  ;;  %v313_v33 = vld [vmem:[#allocation2 + $0xa8] sm:$0xff] }
  0xad   : > { %v740_v40 = vmul.f32 0.1, %v708_v32  ;;  %v693_v41 = vadd.f32 %v1238_v29, %v657_v39  ;;  %638 = vst.msk [vmem:[#allocation2 + $0xd0] sm:$0xff] %vm259_vm2, %v605_v27  ;;  %v546_v42 = vpop.f32.mrf.mxu2 }
  0xae   : > { %v566_v43 = vpop.f32.mrf.mxu3  ;;  %v796_v44 = vpack.c.bf16 %v764_v37, %v764_v37  ;;  %v717_v45 = vmul.f32 0.1, %v685_v38  ;;  %615 = vst.msk [vmem:[#allocation2 + $0x18] sm:$0xff] %vm259_vm2, %v582_v31  ;;  %v598_v46 = vadd.f32 %v546_v42, %v311_v35  ;;  %v509_v48 = vpop.f32.mrf.mxu0  ;;  %v298_v42 = vld [vmem:[#allocation2 + $0x30] sm:$0xff] }
  0xaf   : > { %v606_v47 = vadd.f32 %v566_v43, %v319_v36  ;;  %v529_v49 = vpop.f32.mrf.mxu1  ;;  %v772_v50 = vmax.f32 %v708_v32, %v740_v40  ;;  %v725_v51 = vmul.f32 0.1, %v693_v41  ;;  %623 = vst.msk [vmem:[#allocation2 + $0x58] sm:$0xff] %vm259_vm2, %v590_v34  ;;  %v583_v58 = vadd.f32 %v509_v48, %v296_v52  ;;  %v321_v36 = vld [vmem:[#allocation2 + $0xe8] sm:$0xff]  ;;  %v306_v48 = vld [vmem:[#allocation2 + $0x70] sm:$0xff] }
  0xb0   : > { %829 = vst.msk [vmem:[%s1251_s27 + $0x44] sm:$0xf] %vm811_vm3, %v796_v44  ;;  %v749_v53 = vmax.f32 %v685_v38, %v717_v45  ;;  %v591_v61 = vadd.f32 %v529_v49, %v304_v54 }
  0xb1   : > { %v804_v55 = vpack.c.bf16 %v772_v50, %v772_v50  ;;  %v757_v56 = vmax.f32 %v693_v41, %v725_v51  ;;  %631 = vst.msk [vmem:[#allocation2 + $0x98] sm:$0xff] %vm259_vm2, %v598_v46 }
  0xb2   : > { %v781_v57 = vpack.c.bf16 %v749_v53, %v749_v53  ;;  %639 = vst.msk [vmem:[#allocation2 + $0xd8] sm:$0xff] %vm259_vm2, %v606_v47 }
  0xb3   : > { %837 = vst.msk [vmem:[%s1251_s27 + $0x64] sm:$0xf] %vm811_vm3, %v804_v55  ;;  %v789_v59 = vpack.c.bf16 %v757_v56, %v757_v56  ;;  %v665_v60 = vld [vmem:[#allocation2 + $0x90] sm:$0xff] }
  0xb4   : > { %814 = vst.msk [vmem:[%s1251_s27 + $0x8] sm:$0xf] %vm811_vm3, %v781_v57  ;;  %v701_v0 = vadd.f32 %v1238_v29, %v665_v60  ;;  %v673_v1 = vld [vmem:[#allocation2 + $0xd0] sm:$0xff] }
  0xb5   : > { %822 = vst.msk [vmem:[%s1251_s27 + $0x28] sm:$0xf] %vm811_vm3, %v789_v59  ;;  %v709_v4 = vadd.f32 %v1238_v29, %v673_v1  ;;  %v650_v5 = vld [vmem:[#allocation2 + $0x18] sm:$0xff]  ;;  %v549_v6 = vpop.f32.mrf.mxu2 }
  0xb6   : > { %v569_v7 = vpop.f32.mrf.mxu3  ;;  %v733_v8 = vmul.f32 0.1, %v701_v0  ;;  %v686_v9 = vadd.f32 %v1238_v29, %v650_v5  ;;  %v658_v10 = vld [vmem:[#allocation2 + $0x58] sm:$0xff]  ;;  %616 = vst.msk [vmem:[#allocation2 + $0x20] sm:$0xff] %vm259_vm2, %v583_v58  ;;  %v599_v11 = vadd.f32 %v549_v6, %v312_v62  ;;  %v511_v13 = vpop.f32.mrf.mxu0 }
  0xb7   : > { %v607_v12 = vadd.f32 %v569_v7, %v320_v63  ;;  %v531_v14 = vpop.f32.mrf.mxu1  ;;  %v741_v15 = vmul.f32 0.1, %v709_v4  ;;  %v694_v16 = vadd.f32 %v1238_v29, %v658_v10  ;;  %624 = vst.msk [vmem:[#allocation2 + $0x60] sm:$0xff] %vm259_vm2, %v591_v61  ;;  %v584_v17 = vadd.f32 %v511_v13, %v297_v2 }
  0xb8   : > { %v592_v18 = vadd.f32 %v531_v14, %v305_v3  ;;  %v765_v19 = vmax.f32 %v701_v0, %v733_v8  ;;  %v718_v20 = vmul.f32 0.1, %v686_v9  ;;  %v666_v21 = vld [vmem:[#allocation2 + $0x98] sm:$0xff]  ;;  %632 = vst.msk [vmem:[#allocation2 + $0xa0] sm:$0xff] %vm259_vm2, %v599_v11 }
  0xb9   : > { %v773_v22 = vmax.f32 %v709_v4, %v741_v15  ;;  %v726_v23 = vmul.f32 0.1, %v694_v16  ;;  %v702_v24 = vadd.f32 %v1238_v29, %v666_v21  ;;  %v674_v25 = vld [vmem:[#allocation2 + $0xd8] sm:$0xff]  ;;  %640 = vst.msk [vmem:[#allocation2 + $0xe0] sm:$0xff] %vm259_vm2, %v607_v12  ;;  %v314_v12 = vld [vmem:[#allocation2 + $0xb0] sm:$0xff] }
  0xba   : > { %v797_v26 = vpack.c.bf16 %v765_v19, %v765_v19  ;;  %v750_v27 = vmax.f32 %v686_v9, %v718_v20  ;;  %v710_v28 = vadd.f32 %v1238_v29, %v674_v25  ;;  %617 = vst.msk [vmem:[#allocation2 + $0x28] sm:$0xff] %vm259_vm2, %v584_v17  ;;  %v322_v17 = vld [vmem:[#allocation2 + $0xf0] sm:$0xff]  ;;  %v299_v21 = vld [vmem:[#allocation2 + $0x38] sm:$0xff] }
  0xbb   : > { %v805_v30 = vpack.c.bf16 %v773_v22, %v773_v22  ;;  %v758_v31 = vmax.f32 %v694_v16, %v726_v23  ;;  %v734_v32 = vmul.f32 0.1, %v702_v24  ;;  %625 = vst.msk [vmem:[#allocation2 + $0x68] sm:$0xff] %vm259_vm2, %v592_v18 }
  0xbc   : > { %830 = vst.msk [vmem:[%s1251_s27 + $0x48] sm:$0xf] %vm811_vm3, %v797_v26  ;;  %v782_v34 = vpack.c.bf16 %v750_v27, %v750_v27  ;;  %v742_v35 = vmul.f32 0.1, %v710_v28  ;;  %v307_v26 = vld [vmem:[#allocation2 + $0x78] sm:$0xff] }
  0xbd   : > { %838 = vst.msk [vmem:[%s1251_s27 + $0x68] sm:$0xf] %vm811_vm3, %v805_v30  ;;  %v790_v37 = vpack.c.bf16 %v758_v31, %v758_v31  ;;  %v766_v38 = vmax.f32 %v702_v24, %v734_v32  ;;  %v651_v39 = vld [vmem:[#allocation2 + $0x20] sm:$0xff]  ;;  %v551_v40 = vpop.f32.mrf.mxu2 }
  0xbe   : > { %v571_v41 = vpop.f32.mrf.mxu3  ;;  %815 = vst.msk [vmem:[%s1251_s27 + $0xc] sm:$0xf] %vm811_vm3, %v782_v34  ;;  %v774_v43 = vmax.f32 %v710_v28, %v742_v35  ;;  %v687_v44 = vadd.f32 %v1238_v29, %v651_v39  ;;  %v659_v45 = vld [vmem:[#allocation2 + $0x60] sm:$0xff]  ;;  %v600_v46 = vadd.f32 %v551_v40, %v313_v33  ;;  %v514_v47 = vpop.f32.mrf.mxu0 }
  0xbf   : > { %v534_v49 = vpop.f32.mrf.mxu1  ;;  %823 = vst.msk [vmem:[%s1251_s27 + $0x2c] sm:$0xf] %vm811_vm3, %v790_v37  ;;  %v798_v50 = vpack.c.bf16 %v766_v38, %v766_v38  ;;  %v695_v51 = vadd.f32 %v1238_v29, %v659_v45  ;;  %v667_v52 = vld [vmem:[#allocation2 + $0xa0] sm:$0xff]  ;;  %v608_v53 = vadd.f32 %v571_v41, %v321_v36  ;;  %v585_v58 = vadd.f32 %v514_v47, %v298_v42  ;;  %v315_v37 = vld [vmem:[#allocation2 + $0xb8] sm:$0xff] }
  0xc0   : > { %v806_v54 = vpack.c.bf16 %v774_v43, %v774_v43  ;;  %v719_v55 = vmul.f32 0.1, %v687_v44  ;;  %v703_v56 = vadd.f32 %v1238_v29, %v667_v52  ;;  %v675_v57 = vld [vmem:[#allocation2 + $0xe0] sm:$0xff]  ;;  %633 = vst.msk [vmem:[#allocation2 + $0xa8] sm:$0xff] %vm259_vm2, %v600_v46  ;;  %v593_v62 = vadd.f32 %v534_v49, %v306_v48  ;;  %v323_v38 = vld [vmem:[#allocation2 + $0xf8] sm:$0xff] }
  0xc1   : > { %831 = vst.msk [vmem:[%s1251_s27 + $0x4c] sm:$0xf] %vm811_vm3, %v798_v50  ;;  %v727_v59 = vmul.f32 0.1, %v695_v51  ;;  %v711_v60 = vadd.f32 %v1238_v29, %v675_v57  ;;  %v652_v61 = vld [vmem:[#allocation2 + $0x28] sm:$0xff] }
  0xc2   : > { %839 = vst.msk [vmem:[%s1251_s27 + $0x6c] sm:$0xf] %vm811_vm3, %v806_v54  ;;  %v751_v63 = vmax.f32 %v687_v44, %v719_v55  ;;  %v735_v0 = vmul.f32 0.1, %v703_v56  ;;  %v688_v1 = vadd.f32 %v1238_v29, %v652_v61  ;;  %v660_v2 = vld [vmem:[#allocation2 + $0x68] sm:$0xff] }
  0xc3   : > { %v759_v3 = vmax.f32 %v695_v51, %v727_v59  ;;  %v743_v4 = vmul.f32 0.1, %v711_v60  ;;  %v696_v5 = vadd.f32 %v1238_v29, %v660_v2  ;;  %641 = vst.msk [vmem:[#allocation2 + $0xe8] sm:$0xff] %vm259_vm2, %v608_v53 }
  0xc4   : > { %v783_v6 = vpack.c.bf16 %v751_v63, %v751_v63  ;;  %v767_v7 = vmax.f32 %v703_v56, %v735_v0  ;;  %v720_v8 = vmul.f32 0.1, %v688_v1  ;;  %618 = vst.msk [vmem:[#allocation2 + $0x30] sm:$0xff] %vm259_vm2, %v585_v58 }
  0xc5   : > { %v791_v9 = vpack.c.bf16 %v759_v3, %v759_v3  ;;  %v775_v10 = vmax.f32 %v711_v60, %v743_v4  ;;  %v728_v11 = vmul.f32 0.1, %v696_v5  ;;  %626 = vst.msk [vmem:[#allocation2 + $0x70] sm:$0xff] %vm259_vm2, %v593_v62  ;;  %v554_v13 = vpop.f32.mrf.mxu2 }
  0xc6   : > { %v574_v14 = vpop.f32.mrf.mxu3  ;;  %816 = vst.msk [vmem:[%s1251_s27 + $0x10] sm:$0xf] %vm811_vm3, %v783_v6  ;;  %v799_v15 = vpack.c.bf16 %v767_v7, %v767_v7  ;;  %v752_v16 = vmax.f32 %v688_v1, %v720_v8  ;;  %v516_v22 = vpop.f32.mrf.mxu0  ;;  %v601_v25 = vadd.f32 %v554_v13, %v314_v12 }
  0xc7   : > { %824 = vst.msk [vmem:[%s1251_s27 + $0x30] sm:$0xf] %vm811_vm3, %v791_v9  ;;  %v807_v18 = vpack.c.bf16 %v775_v10, %v775_v10  ;;  %v760_v19 = vmax.f32 %v696_v5, %v728_v11  ;;  %v668_v20 = vld [vmem:[#allocation2 + $0xa8] sm:$0xff]  ;;  %v536_v27 = vpop.f32.mrf.mxu1  ;;  %v609_v30 = vadd.f32 %v574_v14, %v322_v17  ;;  %v586_v33 = vadd.f32 %v516_v22, %v299_v21 }
  0xc8   : > { %832 = vst.msk [vmem:[%s1251_s27 + $0x50] sm:$0xf] %vm811_vm3, %v799_v15  ;;  %v784_v23 = vpack.c.bf16 %v752_v16, %v752_v16  ;;  %v704_v24 = vadd.f32 %v1238_v29, %v668_v20  ;;  %v594_v36 = vadd.f32 %v536_v27, %v307_v26 }
  0xc9   : > { %840 = vst.msk [vmem:[%s1251_s27 + $0x70] sm:$0xf] %vm811_vm3, %v807_v18  ;;  %v792_v28 = vpack.c.bf16 %v760_v19, %v760_v19 }
  0xca   : > { %817 = vst.msk [vmem:[%s1251_s27 + $0x14] sm:$0xf] %vm811_vm3, %v784_v23  ;;  %v736_v31 = vmul.f32 0.1, %v704_v24  ;;  %v676_v32 = vld [vmem:[#allocation2 + $0xe8] sm:$0xff] }
  0xcb   : > { %825 = vst.msk [vmem:[%s1251_s27 + $0x34] sm:$0xf] %vm811_vm3, %v792_v28  ;;  %v712_v34 = vadd.f32 %v1238_v29, %v676_v32  ;;  %v653_v35 = vld [vmem:[#allocation2 + $0x30] sm:$0xff] }
  0xcc   : > { %v768_v39 = vmax.f32 %v704_v24, %v736_v31  ;;  %v689_v40 = vadd.f32 %v1238_v29, %v653_v35  ;;  %v661_v41 = vld [vmem:[#allocation2 + $0x70] sm:$0xff]  ;;  %634 = vst.msk [vmem:[#allocation2 + $0xb0] sm:$0xff] %vm259_vm2, %v601_v25 }
  0xcd   : > { %v744_v42 = vmul.f32 0.1, %v712_v34  ;;  %v697_v43 = vadd.f32 %v1238_v29, %v661_v41  ;;  %642 = vst.msk [vmem:[#allocation2 + $0xf0] sm:$0xff] %vm259_vm2, %v609_v30  ;;  %v556_v44 = vpop.f32.mrf.mxu2 }
  0xce   : > { %v576_v45 = vpop.f32.mrf.mxu3  ;;  %v800_v46 = vpack.c.bf16 %v768_v39, %v768_v39  ;;  %v721_v47 = vmul.f32 0.1, %v689_v40  ;;  %619 = vst.msk [vmem:[#allocation2 + $0x38] sm:$0xff] %vm259_vm2, %v586_v33  ;;  %v602_v48 = vadd.f32 %v556_v44, %v315_v37 }
  0xcf   : > { %v610_v49 = vadd.f32 %v576_v45, %v323_v38  ;;  %v776_v50 = vmax.f32 %v712_v34, %v744_v42  ;;  %v729_v51 = vmul.f32 0.1, %v697_v43  ;;  %627 = vst.msk [vmem:[#allocation2 + $0x78] sm:$0xff] %vm259_vm2, %v594_v36 }
  0xd0   : > { %833 = vst.msk [vmem:[%s1251_s27 + $0x54] sm:$0xf] %vm811_vm3, %v800_v46  ;;  %v753_v52 = vmax.f32 %v689_v40, %v721_v47 }
  0xd1   : > { %v808_v53 = vpack.c.bf16 %v776_v50, %v776_v50  ;;  %v761_v54 = vmax.f32 %v697_v43, %v729_v51  ;;  %635 = vst.msk [vmem:[#allocation2 + $0xb8] sm:$0xff] %vm259_vm2, %v602_v48 }
  0xd2   : > { %v785_v55 = vpack.c.bf16 %v753_v52, %v753_v52  ;;  %643 = vst.msk [vmem:[#allocation2 + $0xf8] sm:$0xff] %vm259_vm2, %v610_v49 }
  0xd3   : > { %841 = vst.msk [vmem:[%s1251_s27 + $0x74] sm:$0xf] %vm811_vm3, %v808_v53  ;;  %v793_v56 = vpack.c.bf16 %v761_v54, %v761_v54  ;;  %v669_v57 = vld [vmem:[#allocation2 + $0xb0] sm:$0xff] }
  0xd4   : > { %818 = vst.msk [vmem:[%s1251_s27 + $0x18] sm:$0xf] %vm811_vm3, %v785_v55  ;;  %v705_v58 = vadd.f32 %v1238_v29, %v669_v57  ;;  %v677_v59 = vld [vmem:[#allocation2 + $0xf0] sm:$0xff] }
  0xd5   : > { %826 = vst.msk [vmem:[%s1251_s27 + $0x38] sm:$0xf] %vm811_vm3, %v793_v56  ;;  %v713_v60 = vadd.f32 %v1238_v29, %v677_v59  ;;  %v654_v61 = vld [vmem:[#allocation2 + $0x38] sm:$0xff] }
  0xd6   : > { %v737_v62 = vmul.f32 0.1, %v705_v58  ;;  %v690_v63 = vadd.f32 %v1238_v29, %v654_v61  ;;  %v662_v0 = vld [vmem:[#allocation2 + $0x78] sm:$0xff] }
  0xd7   : > { %v745_v1 = vmul.f32 0.1, %v713_v60  ;;  %v698_v2 = vadd.f32 %v1238_v29, %v662_v0 }
  0xd8   : > { %v769_v3 = vmax.f32 %v705_v58, %v737_v62  ;;  %v722_v4 = vmul.f32 0.1, %v690_v63  ;;  %v670_v5 = vld [vmem:[#allocation2 + $0xb8] sm:$0xff] }
  0xd9   : > { %v777_v6 = vmax.f32 %v713_v60, %v745_v1  ;;  %v730_v7 = vmul.f32 0.1, %v698_v2  ;;  %v706_v8 = vadd.f32 %v1238_v29, %v670_v5  ;;  %v678_v9 = vld [vmem:[#allocation2 + $0xf8] sm:$0xff] }
  0xda   : > { %v801_v10 = vpack.c.bf16 %v769_v3, %v769_v3  ;;  %v754_v11 = vmax.f32 %v690_v63, %v722_v4  ;;  %v714_v12 = vadd.f32 %v1238_v29, %v678_v9 }
  0xdb   : > { %v809_v13 = vpack.c.bf16 %v777_v6, %v777_v6  ;;  %v762_v14 = vmax.f32 %v698_v2, %v730_v7  ;;  %v738_v15 = vmul.f32 0.1, %v706_v8 }
  0xdc   : > { %834 = vst.msk [vmem:[%s1251_s27 + $0x58] sm:$0xf] %vm811_vm3, %v801_v10  ;;  %v786_v16 = vpack.c.bf16 %v754_v11, %v754_v11  ;;  %v746_v17 = vmul.f32 0.1, %v714_v12 }
  0xdd   : > { %842 = vst.msk [vmem:[%s1251_s27 + $0x78] sm:$0xf] %vm811_vm3, %v809_v13  ;;  %v794_v18 = vpack.c.bf16 %v762_v14, %v762_v14  ;;  %v770_v19 = vmax.f32 %v706_v8, %v738_v15 }
  0xde   : > { %819 = vst.msk [vmem:[%s1251_s27 + $0x1c] sm:$0xf] %vm811_vm3, %v786_v16  ;;  %v778_v20 = vmax.f32 %v714_v12, %v746_v17 }
  0xdf   : > { %827 = vst.msk [vmem:[%s1251_s27 + $0x3c] sm:$0xf] %vm811_vm3, %v794_v18  ;;  %v802_v21 = vpack.c.bf16 %v770_v19, %v770_v19 }
  0xe0   : > { %v810_v22 = vpack.c.bf16 %v778_v20, %v778_v20 }
  0xe1   : > { %835 = vst.msk [vmem:[%s1251_s27 + $0x5c] sm:$0xf] %vm811_vm3, %v802_v21 }
  0xe2   : > { %843 = vst.msk [vmem:[%s1251_s27 + $0x7c] sm:$0xf] %vm811_vm3, %v810_v22 }
  0xe3 PF: > { %s13_s14 = sadd.s32 1, %s1115_s14   ;;  %s1386_s12 = smov %s1111_s13 }
  0xe4   : > { %p10_p5 = scmp.ge.s32.totalorder %s13_s14, 4   ;;  %s1387_s13 = smov %s1389_s15 }
  0xe6   :  { %12 = sbr.rel (!%p10_p5) target bundleno = 2 (0x2), region = 76 }

</bundles_post_ra>
